<compile_context>
chip_gen: v7x
topology: tpu7x:2x2x1
jax: 0.10.0
libtpu: 0.0.40
codegen_flags: <defaults>
</compile_context>

<pallas_src>
import functools

import jax
import jax.numpy as jnp
from jax.experimental import pallas as pl
from jax.experimental.pallas import tpu as pltpu

EPS = 1e-5  # nn.LayerNorm default


def _block_kernel(x_ref, gamma_ref, beta_ref, w_ref, b_ref, out_ref, acc_ref):
    """One (token-tile, layer) grid step of: x = x + Linear_l(LayerNorm_l(x)).

    acc_ref holds the running activation in f32 and stays resident in VMEM
    across the (inner, 'arbitrary') layer axis.
    """
    layer = pl.program_id(1)

    # Load the token tile into the resident f32 accumulator at the first layer.
    @pl.when(layer == 0)
    def _():
        acc_ref[...] = x_ref[...].astype(jnp.float32)

    x = acc_ref[...]                                         # (TM, D) f32

    # LayerNorm over the last axis (biased variance, like torch); stats in f32.
    mean = jnp.mean(x, axis=-1, keepdims=True)
    centered = x - mean
    var = jnp.mean(centered * centered, axis=-1, keepdims=True)
    xn = centered * jax.lax.rsqrt(var + EPS)
    xn = xn * gamma_ref[0] + beta_ref[0]                     # f32 affine

    # Linear on the MXU in bf16 with f32 accumulation, then residual in f32.
    y = jnp.dot(xn.astype(w_ref.dtype), w_ref[0],
                preferred_element_type=jnp.float32)
    acc_ref[...] = x + y + b_ref[0]

    # Write the tile back to HBM only after the last layer.
    @pl.when(layer == pl.num_programs(1) - 1)
    def _():
        out_ref[...] = acc_ref[...].astype(out_ref.dtype)


@functools.partial(jax.jit, static_argnames=("tile_m",))
def block_forward(x, gamma, beta, w, b, *, tile_m=256):
    """Fused Block.forward: all (norm, linear) pairs in a single pallas_call.

    x:            [B, S, D]   activations (bf16 recommended)
    gamma, beta:  [L, 1, D]   LayerNorm affine params (f32)
    w:            [L, D, D]   Linear weights, (in, out) layout (bf16 recommended)
    b:            [L, 1, D]   Linear biases (f32)
    """
    B, S, D = x.shape
    L = w.shape[0]
    n = B * S
    x2d = x.reshape(n, D)

    # Robust tiling: cdiv + zero padding instead of divisibility asserts.
    n_tiles = pl.cdiv(n, tile_m)
    n_pad = n_tiles * tile_m
    if n_pad != n:
        x2d = jnp.pad(x2d, ((0, n_pad - n), (0, 0)))

    act_bytes = x2d.dtype.itemsize
    w_bytes = w.dtype.itemsize

    cost = pl.CostEstimate(
        flops=int(2 * n_pad * D * D * L + 10 * n_pad * D * L),
        transcendentals=int(n_pad * L),
        bytes_accessed=int(2 * n_pad * D * act_bytes
                           + L * (D * D * w_bytes + 3 * D * 4)),
    )

    # Rough VMEM budget: double-buffered x/out tiles, double-buffered per-layer
    # params, plus the resident f32 accumulator. Leave 2x headroom, keep at
    # least the scoped default, cap well under physical VMEM (64 MiB on v7x).
    est = (2 * 2 * tile_m * D * act_bytes
           + 2 * (D * D * w_bytes + 3 * D * 4)
           + tile_m * D * 4)
    vmem_limit = int(min(48 * 1024 * 1024, max(32 * 1024 * 1024, 2 * est)))

    out = pl.pallas_call(
        _block_kernel,
        out_shape=jax.ShapeDtypeStruct((n_pad, D), x.dtype),
        grid_spec=pltpu.PrefetchScalarGridSpec(
            num_scalar_prefetch=0,
            grid=(n_tiles, L),  # tokens (parallel) x layers (arbitrary, carried)
            in_specs=[
                pl.BlockSpec((tile_m, D), lambda i, l: (i, 0)),    # x tile
                pl.BlockSpec((1, 1, D), lambda i, l: (l, 0, 0)),   # gamma_l
                pl.BlockSpec((1, 1, D), lambda i, l: (l, 0, 0)),   # beta_l
                pl.BlockSpec((1, D, D), lambda i, l: (l, 0, 0)),   # W_l
                pl.BlockSpec((1, 1, D), lambda i, l: (l, 0, 0)),   # bias_l
            ],
            out_specs=pl.BlockSpec((tile_m, D), lambda i, l: (i, 0)),
            scratch_shapes=[pltpu.VMEM((tile_m, D), jnp.float32)],
        ),
        compiler_params=pltpu.CompilerParams(
            dimension_semantics=("parallel", "arbitrary"),
            vmem_limit_bytes=vmem_limit,
        ),
        cost_estimate=cost,
    )(x2d, gamma, beta, w, b)

    return out[:n].reshape(B, S, D)


def block_forward_ref(x, gamma, beta, w, b):
    """Pure-JAX reference matching the kernel numerics (f32 LN, bf16 matmul)."""
    xf = x.astype(jnp.float32)
    L = w.shape[0]
    for l in range(L):
        mean = jnp.mean(xf, axis=-1, keepdims=True)
        var = jnp.mean((xf - mean) ** 2, axis=-1, keepdims=True)
        xn = (xf - mean) * jax.lax.rsqrt(var + EPS) * gamma[l] + beta[l]
        y = jnp.dot(xn.astype(w.dtype), w[l],
                    preferred_element_type=jnp.float32)
        xf = xf + y + b[l]
    return xf.astype(x.dtype)


def init_params(key, embed_dim, num_layers):
    """Deterministic synthetic init mirroring Block.__init__ shapes (stacked)."""
    kw, kb, kg, kbe = jax.random.split(key, 4)
    w = (jax.random.normal(kw, (num_layers, embed_dim, embed_dim), jnp.float32)
         / jnp.sqrt(embed_dim)).astype(jnp.bfloat16)         # Linear weight (in,out)
    b = 0.01 * jax.random.normal(kb, (num_layers, 1, embed_dim), jnp.float32)
    # Perturb LN affine params slightly so the affine path is exercised.
    gamma = 1.0 + 0.1 * jax.random.normal(kg, (num_layers, 1, embed_dim), jnp.float32)
    beta = 0.05 * jax.random.normal(kbe, (num_layers, 1, embed_dim), jnp.float32)
    return gamma, beta, w, b


if __name__ == "__main__":
    # Small but lane-dense config: D multiple of 128; 192 tokens -> padded to
    # one 256-row tile (exercises the cdiv+padding path).
    B, S, D = 2, 96, 128
    num_layers = 2

    key = jax.random.PRNGKey(0)
    kx, kp = jax.random.split(key)
    x = jax.random.normal(kx, (B, S, D), jnp.float32).astype(jnp.bfloat16)
    gamma, beta, w, b = init_params(kp, D, num_layers)

    out = block_forward(x, gamma, beta, w, b)
    out = jax.block_until_ready(out)

    ref = block_forward_ref(x, gamma, beta, w, b)
    assert out.shape == (B, S, D)
    assert out.dtype == x.dtype
    # bf16 activations/weights -> loosened tolerances vs the f32-stat reference.
    assert jnp.allclose(out.astype(jnp.float32), ref.astype(jnp.float32),
                        atol=1e-1, rtol=5e-2), "mismatch vs reference"

    # TODO(synk): layer_list is abstract in the spec; tuple-returning layers
    # (e.g. attention returning (out, weights)) are not modeled here.
    print("KERNEL_OK")
</pallas_src>

<mosaic_0001>
module attributes {stable_mosaic.version = 11 : i64} {
  func.func @_block_kernel(%arg0: i32, %arg1: i32, %arg2: memref<256x128xbf16, #tpu.memory_space<vmem>>, %arg3: memref<1x1x128xf32, #tpu.memory_space<vmem>>, %arg4: memref<1x1x128xf32, #tpu.memory_space<vmem>>, %arg5: memref<1x128x128xbf16, #tpu.memory_space<vmem>>, %arg6: memref<1x1x128xf32, #tpu.memory_space<vmem>>, %arg7: memref<256x128xbf16, #tpu.memory_space<vmem>>, %arg8: memref<256x128xf32, #tpu.memory_space<vmem>>) attributes {dimension_semantics = [#tpu.dimension_semantics<parallel>, #tpu.dimension_semantics<arbitrary>], iteration_bounds = array<i64: 1, 2>, scalar_prefetch = 0 : i64, scratch_operands = 1 : i64, tpu.core_type = #tpu.core_type<tc>, window_params = [{transform_indices = @transform_0, window_bounds = array<i64: 256, 128>}, {transform_indices = @transform_1, window_bounds = array<i64: 1, 1, 128>}, {transform_indices = @transform_2, window_bounds = array<i64: 1, 1, 128>}, {transform_indices = @transform_3, window_bounds = array<i64: 1, 128, 128>}, {transform_indices = @transform_4, window_bounds = array<i64: 1, 1, 128>}, {transform_indices = @transform_5, window_bounds = array<i64: 256, 128>}]} {
    %c0_i32 = arith.constant 0 : i32
    %0 = arith.cmpi eq, %arg1, %c0_i32 : i32
    %1 = arith.extui %0 : i1 to i32
    %c0_i32_0 = arith.constant 0 : i32
    %2 = arith.cmpi ne, %1, %c0_i32_0 : i32
    scf.if %2 {
      %c0_22 = arith.constant 0 : index
      %c0_23 = arith.constant 0 : index
      %41 = vector.load %arg2[%c0_22, %c0_23] : memref<256x128xbf16, #tpu.memory_space<vmem>>, vector<256x128xbf16>
      %42 = arith.extf %41 : vector<256x128xbf16> to vector<256x128xf32>
      %c0_24 = arith.constant 0 : index
      %c0_25 = arith.constant 0 : index
      %43 = vector.load %arg8[%c0_24, %c0_25] : memref<256x128xf32, #tpu.memory_space<vmem>>, vector<256x128xf32>
      tpu.vector_store %arg8[%c0_24, %c0_25], %42 {strides = array<i32>} : memref<256x128xf32, #tpu.memory_space<vmem>>, vector<256x128xf32>,
    } else {
    }
    %c0 = arith.constant 0 : index
    %c0_1 = arith.constant 0 : index
    %3 = vector.load %arg8[%c0, %c0_1] : memref<256x128xf32, #tpu.memory_space<vmem>>, vector<256x128xf32>
    %cst = arith.constant dense<0.000000e+00> : vector<256xf32>
    %4 = vector.multi_reduction <add>, %3, %cst [1] : vector<256x128xf32> to vector<256xf32>
    %5 = vector.shape_cast %4 : vector<256xf32> to vector<256x1xf32>
    %cst_2 = arith.constant 1.280000e+02 : f32
    %6 = vector.broadcast %cst_2 : f32 to vector<256x1xf32>
    %7 = arith.divf %5, %6 : vector<256x1xf32>
    %8 = vector.broadcast %7 : vector<256x1xf32> to vector<256x128xf32>
    %9 = arith.subf %3, %8 : vector<256x128xf32>
    %10 = arith.mulf %9, %9 : vector<256x128xf32>
    %cst_3 = arith.constant dense<0.000000e+00> : vector<256xf32>
    %11 = vector.multi_reduction <add>, %10, %cst_3 [1] : vector<256x128xf32> to vector<256xf32>
    %12 = vector.shape_cast %11 : vector<256xf32> to vector<256x1xf32>
    %cst_4 = arith.constant 1.280000e+02 : f32
    %13 = vector.broadcast %cst_4 : f32 to vector<256x1xf32>
    %14 = arith.divf %12, %13 : vector<256x1xf32>
    %cst_5 = arith.constant 9.99999974E-6 : f32
    %15 = vector.broadcast %cst_5 : f32 to vector<256x1xf32>
    %16 = arith.addf %14, %15 : vector<256x1xf32>
    %17 = math.rsqrt %16 : vector<256x1xf32>
    %18 = vector.broadcast %17 : vector<256x1xf32> to vector<256x128xf32>
    %19 = arith.mulf %9, %18 : vector<256x128xf32>
    %c0_6 = arith.constant 0 : index
    %c0_7 = arith.constant 0 : index
    %c0_8 = arith.constant 0 : index
    %20 = vector.load %arg3[%c0_6, %c0_7, %c0_8] : memref<1x1x128xf32, #tpu.memory_space<vmem>>, vector<1x1x128xf32>
    %21 = vector.shape_cast %20 : vector<1x1x128xf32> to vector<1x128xf32>
    %22 = vector.broadcast %21 : vector<1x128xf32> to vector<256x128xf32>
    %23 = arith.mulf %19, %22 : vector<256x128xf32>
    %c0_9 = arith.constant 0 : index
    %c0_10 = arith.constant 0 : index
    %c0_11 = arith.constant 0 : index
    %24 = vector.load %arg4[%c0_9, %c0_10, %c0_11] : memref<1x1x128xf32, #tpu.memory_space<vmem>>, vector<1x1x128xf32>
    %25 = vector.shape_cast %24 : vector<1x1x128xf32> to vector<1x128xf32>
    %26 = vector.broadcast %25 : vector<1x128xf32> to vector<256x128xf32>
    %27 = arith.addf %23, %26 : vector<256x128xf32>
    %28 = arith.truncf %27 : vector<256x128xf32> to vector<256x128xbf16>
    %c0_12 = arith.constant 0 : index
    %c0_13 = arith.constant 0 : index
    %c0_14 = arith.constant 0 : index
    %29 = vector.load %arg5[%c0_12, %c0_13, %c0_14] : memref<1x128x128xbf16, #tpu.memory_space<vmem>>, vector<1x128x128xbf16>
    %30 = vector.shape_cast %29 : vector<1x128x128xbf16> to vector<128x128xbf16>
    %cst_15 = arith.constant dense<0.000000e+00> : vector<256x128xf32>
    %31 = tpu.matmul %28, %30, %cst_15 {dimension_numbers = #tpu.dot_dimension_numbers<[1], [0], [0], [1], [0, 0, 1, 1], [], []>} : vector<256x128xbf16>, vector<128x128xbf16>, vector<256x128xf32> -> vector<256x128xf32>
    %32 = arith.addf %3, %31 : vector<256x128xf32>
    %c0_16 = arith.constant 0 : index
    %c0_17 = arith.constant 0 : index
    %c0_18 = arith.constant 0 : index
    %33 = vector.load %arg6[%c0_16, %c0_17, %c0_18] : memref<1x1x128xf32, #tpu.memory_space<vmem>>, vector<1x1x128xf32>
    %34 = vector.shape_cast %33 : vector<1x1x128xf32> to vector<1x128xf32>
    %35 = vector.broadcast %34 : vector<1x128xf32> to vector<256x128xf32>
    %36 = arith.addf %32, %35 : vector<256x128xf32>
    %c0_19 = arith.constant 0 : index
    %c0_20 = arith.constant 0 : index
    %37 = vector.load %arg8[%c0_19, %c0_20] : memref<256x128xf32, #tpu.memory_space<vmem>>, vector<256x128xf32>
    tpu.vector_store %arg8[%c0_19, %c0_20], %36 {strides = array<i32>} : memref<256x128xf32, #tpu.memory_space<vmem>>, vector<256x128xf32>,
    %c1_i32 = arith.constant 1 : i32
    %38 = arith.cmpi eq, %arg1, %c1_i32 : i32
    %39 = arith.extui %38 : i1 to i32
    %c0_i32_21 = arith.constant 0 : i32
    %40 = arith.cmpi ne, %39, %c0_i32_21 : i32
    scf.if %40 {
      %c0_22 = arith.constant 0 : index
      %c0_23 = arith.constant 0 : index
      %41 = vector.load %arg8[%c0_22, %c0_23] : memref<256x128xf32, #tpu.memory_space<vmem>>, vector<256x128xf32>
      %42 = arith.truncf %41 : vector<256x128xf32> to vector<256x128xbf16>
      %c0_24 = arith.constant 0 : index
      %c0_25 = arith.constant 0 : index
      %43 = vector.load %arg7[%c0_24, %c0_25] : memref<256x128xbf16, #tpu.memory_space<vmem>>, vector<256x128xbf16>
      tpu.vector_store %arg7[%c0_24, %c0_25], %42 {strides = array<i32>} : memref<256x128xbf16, #tpu.memory_space<vmem>>, vector<256x128xbf16>,
    } else {
    }
    return
  }
  func.func @transform_0(%arg0: i32, %arg1: i32) -> (i32, i32) {
    %c0_i32 = arith.constant 0 : i32
    %c0_i32_0 = arith.constant 0 : i32
    return %arg0, %c0_i32 : i32, i32
  }
  func.func @transform_1(%arg0: i32, %arg1: i32) -> (i32, i32, i32) {
    %c0_i32 = arith.constant 0 : i32
    %c0_i32_0 = arith.constant 0 : i32
    %c0_i32_1 = arith.constant 0 : i32
    return %arg1, %c0_i32, %c0_i32_0 : i32, i32, i32
  }
  func.func @transform_2(%arg0: i32, %arg1: i32) -> (i32, i32, i32) {
    %c0_i32 = arith.constant 0 : i32
    %c0_i32_0 = arith.constant 0 : i32
    %c0_i32_1 = arith.constant 0 : i32
    return %arg1, %c0_i32, %c0_i32_0 : i32, i32, i32
  }
  func.func @transform_3(%arg0: i32, %arg1: i32) -> (i32, i32, i32) {
    %c0_i32 = arith.constant 0 : i32
    %c0_i32_0 = arith.constant 0 : i32
    %c0_i32_1 = arith.constant 0 : i32
    return %arg1, %c0_i32, %c0_i32_0 : i32, i32, i32
  }
  func.func @transform_4(%arg0: i32, %arg1: i32) -> (i32, i32, i32) {
    %c0_i32 = arith.constant 0 : i32
    %c0_i32_0 = arith.constant 0 : i32
    %c0_i32_1 = arith.constant 0 : i32
    return %arg1, %c0_i32, %c0_i32_0 : i32, i32, i32
  }
  func.func @transform_5(%arg0: i32, %arg1: i32) -> (i32, i32) {
    %c0_i32 = arith.constant 0 : i32
    %c0_i32_0 = arith.constant 0 : i32
    return %arg0, %c0_i32 : i32, i32
  }
}

</mosaic_0001>

<bundles_post_ra>
// kernel: block_forward.1
= control target key start
LH: loop header
LB: loop body
LE: loop exit
PB: predicated region body
PF: predicated region fallthrough
CT: control target
= control target key end

     0   :  { %s2043_s18 = smov 0   ;;  %s2045_s19 = smov 0   ;;  %s2605_s0 = inlined_call_operand.vmem [shape: bf16[256,128], index: 0, kind: input, shape index: {}]   ;;  %s2606_s1 = inlined_call_operand.vmem [shape: f32[2,1,128], index: 1, kind: input, shape index: {}]   ;;  %s2607_s2 = inlined_call_operand.vmem [shape: f32[2,1,128], index: 2, kind: input, shape index: {}]   ;;  %s2608_s3 = inlined_call_operand.vmem [shape: bf16[2,128,128], index: 3, kind: input, shape index: {}]   ;;  %s2609_s4 = inlined_call_operand.vmem [shape: f32[2,1,128], index: 4, kind: input, shape index: {}]   ;;  %s2610_s5 = inlined_call_operand.vmem [shape: bf16[256,128], index: 5, kind: output, shape index: {}]  }
   0x1   :  { %s2047_s20 = smov 0  }
   0x2 LB: > { %s24_s21 = sadd.s32 1, %s2007_s19  ;;  %p1514_p0 = scmp.ge.s32.totalorder %s2011_s20, 1  ;;  %s2011_s20 = sphi %s2047_s20, %s15_s20   ;;  %s2007_s19 = sphi %s2045_s19, %s2612_s19   ;;  %s2003_s18 = sphi %s2043_s18, %s2611_s18  }
   0x3   : > { %p25_p1 = scmp.ge.s32.totalorder %s24_s21, 2  ;;  %p234_p2 = scmp.lt.s32.totalorder %s2011_s20, 3 }
   0x5   : > { %s2614_s21 = smov (%p25_p1, %s24_s21), 0  ;;  %p235_p3 = pnand %p1514_p0, %p234_p2 }
   0x6   : > { %p282_p4 = scmp.lt.s32.totalorder (!%p235_p3), %s2003_s18, 1  ;;  %p1517_p5 = scmp.ne.s32.totalorder (!%p235_p3), %s2003_s18, 0 }
   0x7   : > { %238 = sbr.rel (%p235_p3) target bundleno = 645 (0x285), region = 40 }
   0xe   : > { %s2065_s22 = scalar_select %p282_p4, %s2003_s18, 1 }
   0xf   : > { %306 = sbr.rel (%p1517_p5) target bundleno = 34 (0x22), region = 44  ;;  %v1600_v0 = vld [vmem:[%s2605_s0] sm:$0xff] (!%p1517_p5)   ;;  %v1743_v1 = vld [vmem:[%s2605_s0 + $0x8] sm:$0xff] (!%p1517_p5)   ;;  %v1744_v2 = vld [vmem:[%s2605_s0 + $0x10] sm:$0xff] (!%p1517_p5)  }
  0x10   : > { %s284_s25 = scalar_lea.vmem %s2606_s1, %s2065_s22  ;;  %s287_s28 = scalar_lea.vmem %s2607_s2, %s2065_s22  ;;  %v1601_v3 = vunpack.c.l.bf16 (!%p1517_p5), %v1600_v0  ;;  %v1602_v4 = vunpack.c.h.bf16 (!%p1517_p5), %v1600_v0  ;;  %v1605_v5 = vunpack.c.l.bf16 (!%p1517_p5), %v1743_v1  ;;  %v1606_v6 = vunpack.c.h.bf16 (!%p1517_p5), %v1743_v1  ;;  %v1745_v7 = vld [vmem:[%s2605_s0 + $0x18] sm:$0xff] (!%p1517_p5)   ;;  %v1746_v8 = vld [vmem:[%s2605_s0 + $0x20] sm:$0xff] (!%p1517_p5)   ;;  %v1747_v9 = vld [vmem:[%s2605_s0 + $0x28] sm:$0xff] (!%p1517_p5)  }
  0x11   : > { %s1566_s29 = sshll.u32 %s2065_s22, 6  ;;  %s295_s7 = scalar_lea.vmem %s2609_s4, %s2065_s22  ;;  %v1609_v10 = vunpack.c.l.bf16 (!%p1517_p5), %v1744_v2  ;;  %v1610_v11 = vunpack.c.h.bf16 (!%p1517_p5), %v1744_v2  ;;  %v1613_v12 = vunpack.c.l.bf16 (!%p1517_p5), %v1745_v7  ;;  %v1614_v13 = vunpack.c.h.bf16 (!%p1517_p5), %v1745_v7  ;;  %v1748_v14 = vld [vmem:[%s2605_s0 + $0x30] sm:$0xff] (!%p1517_p5)   ;;  %v1749_v15 = vld [vmem:[%s2605_s0 + $0x38] sm:$0xff] (!%p1517_p5)   ;;  %v1750_v16 = vld [vmem:[%s2605_s0 + $0x40] sm:$0xff] (!%p1517_p5)  }
  0x12   : > { %s2083_s10 = scalar_lea.vmem %s2608_s3, %s1566_s29  ;;  %371 = vst [vmem:[#allocation2] sm:$0xff] (!%p1517_p5), %v1601_v3  ;;  %372 = vst [vmem:[#allocation2 + $0x8] sm:$0xff] (!%p1517_p5), %v1602_v4  ;;  %v1617_v17 = vunpack.c.l.bf16 (!%p1517_p5), %v1746_v8  ;;  %v1618_v18 = vunpack.c.h.bf16 (!%p1517_p5), %v1746_v8  ;;  %v1621_v19 = vunpack.c.l.bf16 (!%p1517_p5), %v1747_v9  ;;  %v1622_v20 = vunpack.c.h.bf16 (!%p1517_p5), %v1747_v9  ;;  %v1751_v21 = vld [vmem:[%s2605_s0 + $0x48] sm:$0xff] (!%p1517_p5)   ;;  %v1752_v22 = vld [vmem:[%s2605_s0 + $0x50] sm:$0xff] (!%p1517_p5)  }
  0x13   : > { %373 = vst [vmem:[#allocation2 + $0x10] sm:$0xff] (!%p1517_p5), %v1605_v5  ;;  %374 = vst [vmem:[#allocation2 + $0x18] sm:$0xff] (!%p1517_p5), %v1606_v6  ;;  %v1753_v23 = vld [vmem:[%s2605_s0 + $0x58] sm:$0xff] (!%p1517_p5)   ;;  %v1625_v24 = vunpack.c.l.bf16 (!%p1517_p5), %v1748_v14  ;;  %v1626_v25 = vunpack.c.h.bf16 (!%p1517_p5), %v1748_v14  ;;  %v1629_v26 = vunpack.c.l.bf16 (!%p1517_p5), %v1749_v15  ;;  %v1630_v27 = vunpack.c.h.bf16 (!%p1517_p5), %v1749_v15  ;;  %v1754_v28 = vld [vmem:[%s2605_s0 + $0x60] sm:$0xff] (!%p1517_p5)  }
  0x14   : > { %375 = vst [vmem:[#allocation2 + $0x20] sm:$0xff] (!%p1517_p5), %v1609_v10  ;;  %376 = vst [vmem:[#allocation2 + $0x28] sm:$0xff] (!%p1517_p5), %v1610_v11  ;;  %v1755_v29 = vld [vmem:[%s2605_s0 + $0x68] sm:$0xff] (!%p1517_p5)   ;;  %v1633_v30 = vunpack.c.l.bf16 (!%p1517_p5), %v1750_v16  ;;  %v1634_v31 = vunpack.c.h.bf16 (!%p1517_p5), %v1750_v16  ;;  %v1637_v32 = vunpack.c.l.bf16 (!%p1517_p5), %v1751_v21  ;;  %v1638_v33 = vunpack.c.h.bf16 (!%p1517_p5), %v1751_v21  ;;  %v1756_v34 = vld [vmem:[%s2605_s0 + $0x70] sm:$0xff] (!%p1517_p5)  }
  0x15   : > { %377 = vst [vmem:[#allocation2 + $0x30] sm:$0xff] (!%p1517_p5), %v1613_v12  ;;  %378 = vst [vmem:[#allocation2 + $0x38] sm:$0xff] (!%p1517_p5), %v1614_v13  ;;  %v1757_v35 = vld [vmem:[%s2605_s0 + $0x78] sm:$0xff] (!%p1517_p5)   ;;  %v1641_v36 = vunpack.c.l.bf16 (!%p1517_p5), %v1752_v22  ;;  %v1642_v37 = vunpack.c.h.bf16 (!%p1517_p5), %v1752_v22  ;;  %v1645_v38 = vunpack.c.l.bf16 (!%p1517_p5), %v1753_v23  ;;  %v1646_v39 = vunpack.c.h.bf16 (!%p1517_p5), %v1753_v23 }
  0x16   : > { %379 = vst [vmem:[#allocation2 + $0x40] sm:$0xff] %v1617_v17  ;;  %380 = vst [vmem:[#allocation2 + $0x48] sm:$0xff] %v1618_v18  ;;  %v1649_v40 = vunpack.c.l.bf16 %v1754_v28  ;;  %v1650_v41 = vunpack.c.h.bf16 %v1754_v28  ;;  %v1653_v42 = vunpack.c.l.bf16 %v1755_v29  ;;  %v1654_v43 = vunpack.c.h.bf16 %v1755_v29 }
  0x17   : > { %381 = vst [vmem:[#allocation2 + $0x50] sm:$0xff] %v1621_v19  ;;  %382 = vst [vmem:[#allocation2 + $0x58] sm:$0xff] %v1622_v20  ;;  %v1657_v44 = vunpack.c.l.bf16 %v1756_v34  ;;  %v1658_v45 = vunpack.c.h.bf16 %v1756_v34  ;;  %v1661_v46 = vunpack.c.l.bf16 %v1757_v35  ;;  %v1662_v47 = vunpack.c.h.bf16 %v1757_v35 }
  0x18   : > { %383 = vst [vmem:[#allocation2 + $0x60] sm:$0xff] %v1625_v24  ;;  %384 = vst [vmem:[#allocation2 + $0x68] sm:$0xff] %v1626_v25 }
  0x19   : > { %385 = vst [vmem:[#allocation2 + $0x70] sm:$0xff] %v1629_v26  ;;  %386 = vst [vmem:[#allocation2 + $0x78] sm:$0xff] %v1630_v27 }
  0x1a   : > { %387 = vst [vmem:[#allocation2 + $0x80] sm:$0xff] %v1633_v30  ;;  %388 = vst [vmem:[#allocation2 + $0x88] sm:$0xff] %v1634_v31 }
  0x1b   : > { %389 = vst [vmem:[#allocation2 + $0x90] sm:$0xff] %v1637_v32  ;;  %390 = vst [vmem:[#allocation2 + $0x98] sm:$0xff] %v1638_v33 }
  0x1c   : > { %391 = vst [vmem:[#allocation2 + $0xa0] sm:$0xff] %v1641_v36  ;;  %392 = vst [vmem:[#allocation2 + $0xa8] sm:$0xff] %v1642_v37 }
  0x1d   : > { %393 = vst [vmem:[#allocation2 + $0xb0] sm:$0xff] %v1645_v38  ;;  %394 = vst [vmem:[#allocation2 + $0xb8] sm:$0xff] %v1646_v39 }
  0x1e   : > { %395 = vst [vmem:[#allocation2 + $0xc0] sm:$0xff] %v1649_v40  ;;  %396 = vst [vmem:[#allocation2 + $0xc8] sm:$0xff] %v1650_v41 }
  0x1f   : > { %397 = vst [vmem:[#allocation2 + $0xd0] sm:$0xff] %v1653_v42  ;;  %398 = vst [vmem:[#allocation2 + $0xd8] sm:$0xff] %v1654_v43 }
  0x20   : > { %399 = vst [vmem:[#allocation2 + $0xe0] sm:$0xff] %v1657_v44  ;;  %400 = vst [vmem:[#allocation2 + $0xe8] sm:$0xff] %v1658_v45 }
  0x21   : > { %401 = vst [vmem:[#allocation2 + $0xf0] sm:$0xff] %v1661_v46  ;;  %402 = vst [vmem:[#allocation2 + $0xf8] sm:$0xff] %v1662_v47 }
  0x22 PF: > { %v2136_v49 = vld [vmem:[#allocation2 + $0x80] sm:$0xff]  ;;  %v2142_v51 = vld [vmem:[#allocation2 + $0x88] sm:$0xff]  ;;  %v2152_v54 = vld [vmem:[#allocation2 + $0x90] sm:$0xff]  ;;  %p1529_p6 = scmp.ne.s32.totalorder %s2003_s18, 1 }
  0x23   : > { %467 = vadd.xlane.f32.xlu1 %v2136_v49  ;;  %v2154_v55 = vld [vmem:[#allocation2 + $0x98] sm:$0xff]  ;;  %v2164_v58 = vld [vmem:[#allocation2 + $0xa0] sm:$0xff]  ;;  %v2166_v59 = vld [vmem:[#allocation2 + $0xa8] sm:$0xff] }
  0x24   : > { %v2176_v62 = vld [vmem:[#allocation2 + $0xb0] sm:$0xff]  ;;  %v2178_v63 = vld [vmem:[#allocation2 + $0xb8] sm:$0xff]  ;;  %v2206_v8 = vld [vmem:[#allocation2 + $0x60] sm:$0xff] }
  0x25   : > { %v2134_v48 = vld [vmem:[#allocation2] sm:$0xff]  ;;  %v2140_v50 = vld [vmem:[#allocation2 + $0x8] sm:$0xff]  ;;  %v2194_v4 = vld [vmem:[#allocation2 + $0x50] sm:$0xff] }
  0x26   : > { %435 = vadd.xlane.f32.xlu0 %v2134_v48  ;;  %v2146_v52 = vld [vmem:[#allocation2 + $0x10] sm:$0xff]  ;;  %v2148_v53 = vld [vmem:[#allocation2 + $0x18] sm:$0xff]  ;;  %v2188_v2 = vld [vmem:[#allocation2 + $0xc0] sm:$0xff] }
  0x27   : > { %469 = vadd.xlane.f32.xlu1 %v2142_v51  ;;  %v2156_v56 = vld [vmem:[#allocation2 + $0x20] sm:$0xff]  ;;  %v2158_v57 = vld [vmem:[#allocation2 + $0x28] sm:$0xff]  ;;  %v2196_v5 = vld [vmem:[#allocation2 + $0x58] sm:$0xff] }
  0x28   : > { %v2170_v60 = vld [vmem:[#allocation2 + $0x30] sm:$0xff]  ;;  %v2172_v61 = vld [vmem:[#allocation2 + $0x38] sm:$0xff]  ;;  %v2190_v3 = vld [vmem:[#allocation2 + $0xc8] sm:$0xff] }
  0x29   : > { %v2182_v0 = vld [vmem:[#allocation2 + $0x40] sm:$0xff]  ;;  %v2184_v1 = vld [vmem:[#allocation2 + $0x48] sm:$0xff]  ;;  %v2200_v6 = vld [vmem:[#allocation2 + $0xd0] sm:$0xff] }
  0x2a   : > { %437 = vadd.xlane.f32.xlu0 %v2140_v50  ;;  %v2202_v7 = vld [vmem:[#allocation2 + $0xd8] sm:$0xff]  ;;  %v2208_v9 = vld [vmem:[#allocation2 + $0x68] sm:$0xff]  ;;  %v2212_v10 = vld [vmem:[#allocation2 + $0xe0] sm:$0xff] }
  0x2b   : > { %441 = vadd.xlane.f32.xlu1 %v2148_v53  ;;  %v2214_v11 = vld [vmem:[#allocation2 + $0xe8] sm:$0xff]  ;;  %v2218_v12 = vld [vmem:[#allocation2 + $0x70] sm:$0xff]  ;;  %v2220_v13 = vld [vmem:[#allocation2 + $0x78] sm:$0xff] }
  0x2c   : > { %v2224_v14 = vld [vmem:[#allocation2 + $0xf0] sm:$0xff]  ;;  %v2226_v15 = vld [vmem:[#allocation2 + $0xf8] sm:$0xff] }
  0x2e   : > { %439 = vadd.xlane.f32.xlu0 %v2146_v52 }
  0x2f   : > { %473 = vadd.xlane.f32.xlu1 %v2154_v55 }
  0x32   : > { %471 = vadd.xlane.f32.xlu0 %v2152_v54 }
  0x33   : > { %445 = vadd.xlane.f32.xlu1 %v2158_v57 }
  0x36   : > { %443 = vadd.xlane.f32.xlu0 %v2156_v56 }
  0x37   : > { %477 = vadd.xlane.f32.xlu1 %v2166_v59 }
  0x3a   : > { %475 = vadd.xlane.f32.xlu0 %v2164_v58 }
  0x3b   : > { %449 = vadd.xlane.f32.xlu1 %v2172_v61 }
  0x3e   : > { %447 = vadd.xlane.f32.xlu0 %v2170_v60 }
  0x3f   : > { %481 = vadd.xlane.f32.xlu1 %v2178_v63 }
  0x42   : > { %479 = vadd.xlane.f32.xlu0 %v2176_v62 }
  0x43   : > { %453 = vadd.xlane.f32.xlu1 %v2184_v1 }
  0x46   : > { %451 = vadd.xlane.f32.xlu0 %v2182_v0 }
  0x47   : > { %485 = vadd.xlane.f32.xlu1 %v2190_v3 }
  0x4a   : > { %483 = vadd.xlane.f32.xlu0 %v2188_v2 }
  0x4b   : > { %457 = vadd.xlane.f32.xlu1 %v2196_v5 }
  0x4e   : > { %455 = vadd.xlane.f32.xlu0 %v2194_v4 }
  0x4f   : > { %489 = vadd.xlane.f32.xlu1 %v2202_v7 }
  0x52   : > { %487 = vadd.xlane.f32.xlu0 %v2200_v6 }
  0x53   : > { %461 = vadd.xlane.f32.xlu1 %v2208_v9 }
  0x56   : > { %459 = vadd.xlane.f32.xlu0 %v2206_v8 }
  0x57   : > { %493 = vadd.xlane.f32.xlu1 %v2214_v11 }
  0x5a   : > { %491 = vadd.xlane.f32.xlu0 %v2212_v10 }
  0x5b   : > { %465 = vadd.xlane.f32.xlu1 %v2220_v13 }
  0x5e   : > { %463 = vadd.xlane.f32.xlu0 %v2218_v12 }
  0x5f   : > { %497 = vadd.xlane.f32.xlu1 %v2226_v15 }
  0x62   : > { %495 = vadd.xlane.f32.xlu0 %v2224_v14 }
  0xb0   : > { %v468_v17 = vpop.xlane.xlu1 %467 }
  0xb1   : > { %v516_v19 = vmul.f32 0.0078125, %v468_v17 }
  0xb3   : > { %v436_v16 = vpop.xlane.xlu0 %435  ;;  %v2234_v21 = vsub.f32 %v2136_v49, %v516_v19  ;;  %v1885_v19 = vld [vmem:[%s2083_s10] sm:$0xff]  }
  0xb4   : > { %v500_v18 = vmul.f32 0.0078125, %v436_v16  ;;  %v470_v23 = vpop.xlane.xlu1 %469  ;;  %1797 = vmatprep.subr.bf16.mxu0 %v1885_v19  ;;  %1845 = vmatprep.subr.bf16.mxu1 %v1885_v19 }
  0xb5   : > { %v517_v26 = vmul.f32 0.0078125, %v470_v23  ;;  %v580_v29 = vmul.f32 %v2234_v21, %v2234_v21  ;;  %1798 = vmatpush3.bf16.msra.mxu0 %v1885_v19  ;;  %1853 = vmatpush3.bf16.msra.mxu1 %v1885_v19 }
  0xb6   : > { %v2231_v20 = vsub.f32 %v2134_v48, %v500_v18 }
  0xb7   : > { %v438_v22 = vpop.xlane.xlu0 %437  ;;  %v2242_v28 = vsub.f32 %v2142_v51, %v517_v26 }
  0xb8   : > { %v501_v24 = vmul.f32 0.0078125, %v438_v22  ;;  %v564_v25 = vmul.f32 %v2231_v20, %v2231_v20  ;;  %v442_v31 = vpop.xlane.xlu1 %441 }
  0xb9   : > { %v503_v34 = vmul.f32 0.0078125, %v442_v31  ;;  %v581_v37 = vmul.f32 %v2242_v28, %v2242_v28  ;;  %v1886_v31 = vld [vmem:[%s2083_s10 + $0x8] sm:$0xff]  }
  0xba   : > { %v2239_v27 = vsub.f32 %v2140_v50, %v501_v24  ;;  %596 = vadd.xlane.f32.xlu0 %v564_v25  ;;  %1799 = vmatprep.subr.bf16.mxu0 %v1886_v31 }
  0xbb   : > { %v440_v30 = vpop.xlane.xlu0 %439  ;;  %v2252_v36 = vsub.f32 %v2148_v53, %v503_v34  ;;  %1846 = vmatprep.subr.bf16.mxu1 %v1886_v31  ;;  %1800 = vmatpush3.bf16.msra.mxu0 %v1886_v31 }
  0xbc   : > { %v502_v32 = vmul.f32 0.0078125, %v440_v30  ;;  %v565_v33 = vmul.f32 %v2239_v27, %v2239_v27  ;;  %v474_v39 = vpop.xlane.xlu1 %473  ;;  %1854 = vmatpush3.bf16.msra.mxu1 %v1886_v31 }
  0xbd   : > { %v519_v42 = vmul.f32 0.0078125, %v474_v39  ;;  %v567_v45 = vmul.f32 %v2252_v36, %v2252_v36 }
  0xbe   : > { %v2249_v35 = vsub.f32 %v2146_v52, %v502_v32  ;;  %628 = vadd.xlane.f32.xlu0 %v580_v29  ;;  %598 = vadd.xlane.f32.xlu1 %v565_v33 }
  0xbf   : > { %v472_v38 = vpop.xlane.xlu0 %471  ;;  %v2262_v44 = vsub.f32 %v2154_v55, %v519_v42 }
  0xc0   : > { %v518_v40 = vmul.f32 0.0078125, %v472_v38  ;;  %v566_v41 = vmul.f32 %v2249_v35, %v2249_v35  ;;  %v446_v47 = vpop.xlane.xlu1 %445 }
  0xc1   : > { %v505_v50 = vmul.f32 0.0078125, %v446_v47  ;;  %v583_v53 = vmul.f32 %v2262_v44, %v2262_v44 }
  0xc2   : > { %v2259_v43 = vsub.f32 %v2152_v54, %v518_v40  ;;  %630 = vadd.xlane.f32.xlu1 %v581_v37  ;;  %600 = vadd.xlane.f32.xlu0 %v566_v41  ;;  %v1887_v40 = vld [vmem:[%s2083_s10 + $0x10] sm:$0xff]  }
  0xc3   : > { %v444_v46 = vpop.xlane.xlu0 %443  ;;  %v2272_v52 = vsub.f32 %v2158_v57, %v505_v50  ;;  %1801 = vmatprep.subr.bf16.mxu0 %v1887_v40  ;;  %1847 = vmatprep.subr.bf16.mxu1 %v1887_v40 }
  0xc4   : > { %v504_v48 = vmul.f32 0.0078125, %v444_v46  ;;  %v582_v49 = vmul.f32 %v2259_v43, %v2259_v43  ;;  %v478_v55 = vpop.xlane.xlu1 %477  ;;  %1802 = vmatpush3.bf16.msra.mxu0 %v1887_v40  ;;  %1855 = vmatpush3.bf16.msra.mxu1 %v1887_v40 }
  0xc5   : > { %v521_v18 = vmul.f32 0.0078125, %v478_v55  ;;  %v569_v57 = vmul.f32 %v2272_v52, %v2272_v52 }
  0xc6   : > { %v2269_v51 = vsub.f32 %v2156_v56, %v504_v48  ;;  %602 = vadd.xlane.f32.xlu1 %v567_v45  ;;  %632 = vadd.xlane.f32.xlu0 %v582_v49  ;;  %v1888_v49 = vld [vmem:[%s2083_s10 + $0x18] sm:$0xff]  }
  0xc7   : > { %v476_v54 = vpop.xlane.xlu0 %475  ;;  %v2283_v56 = vsub.f32 %v2166_v59, %v521_v18  ;;  %1803 = vmatprep.subr.bf16.mxu0 %v1888_v49  ;;  %1848 = vmatprep.subr.bf16.mxu1 %v1888_v49  ;;  %v1889_v18 = vld [vmem:[%s2083_s10 + $0x20] sm:$0xff]  }
  0xc8   : > { %v520_v16 = vmul.f32 0.0078125, %v476_v54  ;;  %v568_v17 = vmul.f32 %v2269_v51, %v2269_v51  ;;  %v450_v24 = vpop.xlane.xlu1 %449  ;;  %1804 = vmatpush3.bf16.msra.mxu0 %v1888_v49  ;;  %1856 = vmatpush3.bf16.msra.mxu1 %v1888_v49 }
  0xc9   : > { %v507_v29 = vmul.f32 0.0078125, %v450_v24  ;;  %v585_v30 = vmul.f32 %v2283_v56, %v2283_v56  ;;  %1805 = vmatprep.subr.bf16.mxu0 %v1889_v18  ;;  %1849 = vmatprep.subr.bf16.mxu1 %v1889_v18 }
  0xca   : > { %v2280_v22 = vsub.f32 %v2164_v58, %v520_v16  ;;  %634 = vadd.xlane.f32.xlu1 %v583_v53  ;;  %604 = vadd.xlane.f32.xlu0 %v568_v17 }
  0xcb   : > { %v448_v23 = vpop.xlane.xlu0 %447  ;;  %v2293_v59 = vsub.f32 %v2172_v61, %v507_v29  ;;  %v1890_v29 = vld [vmem:[%s2083_s10 + $0x28] sm:$0xff]  }
  0xcc   : > { %v506_v25 = vmul.f32 0.0078125, %v448_v23  ;;  %v584_v26 = vmul.f32 %v2280_v22, %v2280_v22  ;;  %v482_v33 = vpop.xlane.xlu1 %481  ;;  %1806 = vmatpush3.bf16.msra.mxu0 %v1889_v18  ;;  %1857 = vmatpush3.bf16.msra.mxu1 %v1889_v18 }
  0xcd   : > { %v523_v38 = vmul.f32 0.0078125, %v482_v33  ;;  %v571_v39 = vmul.f32 %v2293_v59, %v2293_v59  ;;  %1807 = vmatprep.subr.bf16.mxu0 %v1890_v29  ;;  %1850 = vmatprep.subr.bf16.mxu1 %v1890_v29 }
  0xce   : > { %v2290_v58 = vsub.f32 %v2170_v60, %v506_v25  ;;  %606 = vadd.xlane.f32.xlu1 %v569_v57  ;;  %636 = vadd.xlane.f32.xlu0 %v584_v26 }
  0xcf   : > { %v480_v32 = vpop.xlane.xlu0 %479  ;;  %v2304_v61 = vsub.f32 %v2178_v63, %v523_v38  ;;  %v1891_v38 = vld [vmem:[%s2083_s10 + $0x30] sm:$0xff]  }
  0xd0   : > { %v522_v34 = vmul.f32 0.0078125, %v480_v32  ;;  %v570_v37 = vmul.f32 %v2290_v58, %v2290_v58  ;;  %v454_v42 = vpop.xlane.xlu1 %453  ;;  %1808 = vmatpush3.bf16.msra.mxu0 %v1890_v29  ;;  %1858 = vmatpush3.bf16.msra.mxu1 %v1890_v29 }
  0xd1   : > { %v509_v47 = vmul.f32 0.0078125, %v454_v42  ;;  %v587_v48 = vmul.f32 %v2304_v61, %v2304_v61  ;;  %1809 = vmatprep.subr.bf16.mxu0 %v1891_v38  ;;  %1851 = vmatprep.subr.bf16.mxu1 %v1891_v38 }
  0xd2   : > { %v2301_v60 = vsub.f32 %v2176_v62, %v522_v34  ;;  %638 = vadd.xlane.f32.xlu1 %v585_v30  ;;  %608 = vadd.xlane.f32.xlu0 %v570_v37 }
  0xd3   : > { %v452_v41 = vpop.xlane.xlu0 %451  ;;  %v2315_v63 = vsub.f32 %v2184_v1, %v509_v47  ;;  %v1892_v47 = vld [vmem:[%s2083_s10 + $0x38] sm:$0xff]  }
  0xd4   : > { %v508_v45 = vmul.f32 0.0078125, %v452_v41  ;;  %v586_v46 = vmul.f32 %v2301_v60, %v2301_v60  ;;  %v486_v53 = vpop.xlane.xlu1 %485  ;;  %1810 = vmatpush3.bf16.msra.mxu0 %v1891_v38  ;;  %1859 = vmatpush3.bf16.msra.mxu1 %v1891_v38 }
  0xd5   : > { %v525_v16 = vmul.f32 0.0078125, %v486_v53  ;;  %v573_v17 = vmul.f32 %v2315_v63, %v2315_v63  ;;  %1811 = vmatprep.subr.bf16.mxu0 %v1892_v47  ;;  %1852 = vmatprep.subr.bf16.mxu1 %v1892_v47 }
  0xd6   : > { %v2312_v62 = vsub.f32 %v2182_v0, %v508_v45  ;;  %610 = vadd.xlane.f32.xlu1 %v571_v39  ;;  %640 = vadd.xlane.f32.xlu0 %v586_v46 }
  0xd7   : > { %v484_v50 = vpop.xlane.xlu0 %483  ;;  %v2326_v1 = vsub.f32 %v2190_v3, %v525_v16 }
  0xd8   : > { %v524_v54 = vmul.f32 0.0078125, %v484_v50  ;;  %v572_v55 = vmul.f32 %v2312_v62, %v2312_v62  ;;  %v458_v57 = vpop.xlane.xlu1 %457  ;;  %1812 = vmatpush3.bf16.msra.mxu0 %v1892_v47  ;;  %1860 = vmatpush3.bf16.msra.mxu1 %v1892_v47 }
  0xd9   : > { %v511_v25 = vmul.f32 0.0078125, %v458_v57  ;;  %v589_v26 = vmul.f32 %v2326_v1, %v2326_v1 }
  0xda   : > { %v2323_v0 = vsub.f32 %v2188_v2, %v524_v54  ;;  %642 = vadd.xlane.f32.xlu1 %v587_v48  ;;  %612 = vadd.xlane.f32.xlu0 %v572_v55 }
  0xdb   : > { %v456_v19 = vpop.xlane.xlu0 %455  ;;  %v2337_v3 = vsub.f32 %v2196_v5, %v511_v25 }
  0xdc   : > { %v510_v23 = vmul.f32 0.0078125, %v456_v19  ;;  %v588_v24 = vmul.f32 %v2323_v0, %v2323_v0  ;;  %v490_v31 = vpop.xlane.xlu1 %489 }
  0xdd   : > { %v527_v34 = vmul.f32 0.0078125, %v490_v31  ;;  %v575_v37 = vmul.f32 %v2337_v3, %v2337_v3 }
  0xde   : > { %v2334_v2 = vsub.f32 %v2194_v4, %v510_v23  ;;  %614 = vadd.xlane.f32.xlu1 %v573_v17  ;;  %644 = vadd.xlane.f32.xlu0 %v588_v24 }
  0xdf   : > { %v488_v30 = vpop.xlane.xlu0 %487  ;;  %v2348_v5 = vsub.f32 %v2202_v7, %v527_v34 }
  0xe0   : > { %v526_v32 = vmul.f32 0.0078125, %v488_v30  ;;  %v574_v33 = vmul.f32 %v2334_v2, %v2334_v2  ;;  %v462_v40 = vpop.xlane.xlu1 %461 }
  0xe1   : > { %v513_v45 = vmul.f32 0.0078125, %v462_v40  ;;  %v591_v46 = vmul.f32 %v2348_v5, %v2348_v5 }
  0xe2   : > { %v2345_v4 = vsub.f32 %v2200_v6, %v526_v32  ;;  %646 = vadd.xlane.f32.xlu1 %v589_v26  ;;  %616 = vadd.xlane.f32.xlu0 %v574_v33 }
  0xe3   : > { %v460_v39 = vpop.xlane.xlu0 %459  ;;  %v2359_v7 = vsub.f32 %v2208_v9, %v513_v45 }
  0xe4   : > { %v512_v41 = vmul.f32 0.0078125, %v460_v39  ;;  %v590_v42 = vmul.f32 %v2345_v4, %v2345_v4  ;;  %v494_v49 = vpop.xlane.xlu1 %493 }
  0xe5   : > { %v529_v54 = vmul.f32 0.0078125, %v494_v49  ;;  %v577_v55 = vmul.f32 %v2359_v7, %v2359_v7 }
  0xe6   : > { %v2356_v6 = vsub.f32 %v2206_v8, %v512_v41  ;;  %618 = vadd.xlane.f32.xlu1 %v575_v37  ;;  %648 = vadd.xlane.f32.xlu0 %v590_v42 }
  0xe7   : > { %v492_v48 = vpop.xlane.xlu0 %491  ;;  %v2370_v9 = vsub.f32 %v2214_v11, %v529_v54 }
  0xe8   : > { %v528_v50 = vmul.f32 0.0078125, %v492_v48  ;;  %v576_v53 = vmul.f32 %v2356_v6, %v2356_v6  ;;  %v466_v17 = vpop.xlane.xlu1 %465 }
  0xe9   : > { %v515_v57 = vmul.f32 0.0078125, %v466_v17  ;;  %v593_v11 = vmul.f32 %v2370_v9, %v2370_v9 }
  0xea   : > { %v2367_v8 = vsub.f32 %v2212_v10, %v528_v50  ;;  %650 = vadd.xlane.f32.xlu1 %v591_v46  ;;  %620 = vadd.xlane.f32.xlu0 %v576_v53 }
  0xeb   : > { %v464_v16 = vpop.xlane.xlu0 %463  ;;  %v2380_v10 = vsub.f32 %v2220_v13, %v515_v57 }
  0xec   : > { %v514_v18 = vmul.f32 0.0078125, %v464_v16  ;;  %v592_v19 = vmul.f32 %v2367_v8, %v2367_v8  ;;  %v498_v25 = vpop.xlane.xlu1 %497 }
  0xed   : > { %v531_v30 = vmul.f32 0.0078125, %v498_v25  ;;  %v579_v13 = vmul.f32 %v2380_v10, %v2380_v10 }
  0xee   : > { %v2377_v23 = vsub.f32 %v2218_v12, %v514_v18  ;;  %622 = vadd.xlane.f32.xlu1 %v577_v55  ;;  %652 = vadd.xlane.f32.xlu0 %v592_v19 }
  0xef   : > { %v496_v24 = vpop.xlane.xlu0 %495  ;;  %v2390_v12 = vsub.f32 %v2226_v15, %v531_v30 }
  0xf0   : > { %v530_v26 = vmul.f32 0.0078125, %v496_v24  ;;  %v578_v29 = vmul.f32 %v2377_v23, %v2377_v23 }
  0xf1   : > { %v595_v33 = vmul.f32 %v2390_v12, %v2390_v12 }
  0xf2   : > { %v2387_v31 = vsub.f32 %v2224_v14, %v530_v26  ;;  %654 = vadd.xlane.f32.xlu1 %v593_v11  ;;  %624 = vadd.xlane.f32.xlu0 %v578_v29  ;;  %v2404_v29 = vld [vmem:[%s284_s25] ss:$0 sm:$0xff] }
  0xf4   : > { %v594_v32 = vmul.f32 %v2387_v31, %v2387_v31 }
  0xf6   : > { %626 = vadd.xlane.f32.xlu1 %v579_v13  ;;  %656 = vadd.xlane.f32.xlu0 %v594_v32 }
  0xfa   : > { %658 = vadd.xlane.f32.xlu1 %v595_v33 }
 0x147   : > { %v597_v34 = vpop.xlane.xlu0 %596 }
 0x148   : > { %v660_v14 = vmul.f32 0.0078125, %v597_v34 }
 0x14a   : > { %v692_v37 = vadd.f32 1e-05, %v660_v14 }
 0x14b   : > { %v599_v38 = vpop.xlane.xlu1 %598  ;;  %v629_v39 = vpop.xlane.xlu0 %628 }
 0x14c   : > { %1893 = vrsqrt.f32 %v692_v37  ;;  %v661_v15 = vmul.f32 0.0078125, %v599_v38  ;;  %v676_v40 = vmul.f32 0.0078125, %v629_v39 }
 0x14e   : > { %v693_v41 = vadd.f32 1e-05, %v661_v15  ;;  %v708_v42 = vadd.f32 1e-05, %v676_v40  ;;  %v2413_v15 = vld [vmem:[%s287_s28] ss:$0 sm:$0xff] }
 0x14f   : > { %v631_v45 = vpop.xlane.xlu1 %630  ;;  %v601_v46 = vpop.xlane.xlu0 %600 }
 0x150   : > { %1895 = vrsqrt.f32 %v693_v41  ;;  %v677_v47 = vmul.f32 0.0078125, %v631_v45  ;;  %v662_v48 = vmul.f32 0.0078125, %v601_v46 }
 0x151   : > { %1897 = vrsqrt.f32 %v708_v42 }
 0x152   : > { %v709_v49 = vadd.f32 1e-05, %v677_v47  ;;  %v694_v50 = vadd.f32 1e-05, %v662_v48 }
 0x153   : > { %v603_v53 = vpop.xlane.xlu1 %602  ;;  %v633_v54 = vpop.xlane.xlu0 %632 }
 0x154   : > { %1899 = vrsqrt.f32 %v709_v49  ;;  %v663_v55 = vmul.f32 0.0078125, %v603_v53  ;;  %v678_v16 = vmul.f32 0.0078125, %v633_v54 }
 0x155   : > { %1901 = vrsqrt.f32 %v694_v50 }
 0x156   : > { %v1894_v17 = vpop.eup %1893  ;;  %v695_v18 = vadd.f32 1e-05, %v663_v55  ;;  %v710_v19 = vadd.f32 1e-05, %v678_v16 }
 0x157   : > { %v635_v57 = vpop.xlane.xlu1 %634  ;;  %v605_v11 = vpop.xlane.xlu0 %604  ;;  %v756_v24 = vmul.f32 %v1894_v17, %v2231_v20 }
 0x158   : > { %1903 = vrsqrt.f32 %v695_v18  ;;  %v679_v25 = vmul.f32 0.0078125, %v635_v57  ;;  %v664_v26 = vmul.f32 0.0078125, %v605_v11 }
 0x159   : > { %1905 = vrsqrt.f32 %v710_v19  ;;  %v795_v20 = vmul.f32 %v2404_v29, %v756_v24 }
 0x15a   : > { %v1896_v30 = vpop.eup %1895  ;;  %v711_v13 = vadd.f32 1e-05, %v679_v25  ;;  %v696_v32 = vadd.f32 1e-05, %v664_v26 }
 0x15b   : > { %v1898_v33 = vpop.eup %1897  ;;  %v607_v34 = vpop.xlane.xlu1 %606  ;;  %v757_v37 = vmul.f32 %v1896_v30, %v2239_v27  ;;  %v834_v49 = vadd.f32 %v2413_v15, %v795_v20 }
 0x15c   : > { %v637_v14 = vpop.xlane.xlu0 %636  ;;  %1907 = vrsqrt.f32 %v711_v13  ;;  %v665_v38 = vmul.f32 0.0078125, %v607_v34  ;;  %v772_v40 = vmul.f32 %v1898_v33, %v2234_v21 }
 0x15d   : > { %v680_v39 = vmul.f32 0.0078125, %v637_v14  ;;  %1909 = vrsqrt.f32 %v696_v32  ;;  %v796_v41 = vmul.f32 %v2404_v29, %v757_v37 }
 0x15e   : > { %v1900_v42 = vpop.eup %1899  ;;  %v697_v45 = vadd.f32 1e-05, %v665_v38  ;;  %v811_v54 = vmul.f32 %v2404_v29, %v772_v40 }
 0x15f   : > { %v712_v46 = vadd.f32 1e-05, %v680_v39  ;;  %v1902_v27 = vpop.eup %1901  ;;  %v639_v47 = vpop.xlane.xlu1 %638  ;;  %v835_v50 = vadd.f32 %v2413_v15, %v796_v41  ;;  %v773_v53 = vmul.f32 %v1900_v42, %v2242_v28 }
 0x160   : > { %v609_v48 = vpop.xlane.xlu0 %608  ;;  %1911 = vrsqrt.f32 %v697_v45  ;;  %v681_v55 = vmul.f32 0.0078125, %v639_v47  ;;  %v758_v18 = vmul.f32 %v1902_v27, %v2249_v35  ;;  %v850_v28 = vadd.f32 %v2413_v15, %v811_v54 }
 0x161   : > { %v666_v21 = vmul.f32 0.0078125, %v609_v48  ;;  %1913 = vrsqrt.f32 %v712_v46  ;;  %v866_v16 = vpack.c.bf16 %v835_v50, %v834_v49  ;;  %v812_v17 = vmul.f32 %v2404_v29, %v773_v53 }
 0x162   : > { %v1904_v19 = vpop.eup %1903  ;;  %v713_v57 = vadd.f32 1e-05, %v681_v55  ;;  %v797_v32 = vmul.f32 %v2404_v29, %v758_v18 }
 0x163   : > { %v698_v11 = vadd.f32 1e-05, %v666_v21  ;;  %v1906_v24 = vpop.eup %1905  ;;  %v611_v25 = vpop.xlane.xlu1 %610  ;;  %1813 = vmatprep.mubr.bf16.mxu0 %v866_v16  ;;  %v851_v30 = vadd.f32 %v2413_v15, %v812_v17  ;;  %v759_v13 = vmul.f32 %v1904_v19, %v2252_v36 }
 0x164   : > { %v641_v26 = vpop.xlane.xlu0 %640  ;;  %1915 = vrsqrt.f32 %v713_v57  ;;  %v667_v33 = vmul.f32 0.0078125, %v611_v25  ;;  %v774_v35 = vmul.f32 %v1906_v24, %v2259_v43  ;;  %v836_v36 = vadd.f32 %v2413_v15, %v797_v32 }
 0x165   : > { %v682_v34 = vmul.f32 0.0078125, %v641_v26  ;;  %1917 = vrsqrt.f32 %v698_v11  ;;  %v874_v14 = vpack.c.bf16 %v851_v30, %v850_v28  ;;  %v798_v37 = vmul.f32 %v2404_v29, %v759_v13 }
 0x166   : > { %v1908_v20 = vpop.eup %1907  ;;  %v699_v38 = vadd.f32 1e-05, %v667_v33  ;;  %v813_v27 = vmul.f32 %v2404_v29, %v774_v35 }
 0x167   : > { %v714_v39 = vadd.f32 1e-05, %v682_v34  ;;  %v1910_v40 = vpop.eup %1909  ;;  %v643_v41 = vpop.xlane.xlu1 %642  ;;  %1829 = vmatprep.mubr.bf16.mxu1 %v874_v14  ;;  %v837_v45 = vadd.f32 %v2413_v15, %v798_v37  ;;  %v775_v46 = vmul.f32 %v1908_v20, %v2262_v44 }
 0x168   : > { %v613_v42 = vpop.xlane.xlu0 %612  ;;  %1919 = vrsqrt.f32 %v699_v38  ;;  %v683_v43 = vmul.f32 0.0078125, %v643_v41  ;;  %v760_v50 = vmul.f32 %v1910_v40, %v2269_v51  ;;  %v852_v44 = vadd.f32 %v2413_v15, %v813_v27 }
 0x169   : > { %v668_v47 = vmul.f32 0.0078125, %v613_v42  ;;  %1921 = vrsqrt.f32 %v714_v39  ;;  %v867_v48 = vpack.c.bf16 %v837_v45, %v836_v36  ;;  %v814_v49 = vmul.f32 %v2404_v29, %v775_v46 }
 0x16a   : > { %v1912_v53 = vpop.eup %1911  ;;  %v715_v54 = vadd.f32 1e-05, %v683_v43  ;;  %v799_v57 = vmul.f32 %v2404_v29, %v760_v50 }
 0x16b   : > { %v700_v55 = vadd.f32 1e-05, %v668_v47  ;;  %v1914_v21 = vpop.eup %1913  ;;  %v615_v16 = vpop.xlane.xlu1 %614  ;;  %1814 = vmatmul.mubr.bf16.vlgmr.msra.gmra.mrb[0].mxu0 %v867_v48  ;;  %v853_v18 = vadd.f32 %v2413_v15, %v814_v49  ;;  %v761_v19 = vmul.f32 %v1912_v53, %v2272_v52 }
 0x16c   : > { %v645_v17 = vpop.xlane.xlu0 %644  ;;  %1923 = vrsqrt.f32 %v715_v54  ;;  %v669_v11 = vmul.f32 0.0078125, %v615_v16  ;;  %v776_v51 = vmul.f32 %v1914_v21, %v2280_v22  ;;  %v838_v52 = vadd.f32 %v2413_v15, %v799_v57 }
 0x16d   : > { %v684_v24 = vmul.f32 0.0078125, %v645_v17  ;;  %1925 = vrsqrt.f32 %v700_v55  ;;  %v875_v25 = vpack.c.bf16 %v853_v18, %v852_v44  ;;  %v800_v26 = vmul.f32 %v2404_v29, %v761_v19 }
 0x16e   : > { %v1916_v28 = vpop.eup %1915  ;;  %v701_v30 = vadd.f32 1e-05, %v669_v11  ;;  %v815_v37 = vmul.f32 %v2404_v29, %v776_v51 }
 0x16f   : > { %v716_v13 = vadd.f32 1e-05, %v684_v24  ;;  %v1918_v32 = vpop.eup %1917  ;;  %v647_v33 = vpop.xlane.xlu1 %646  ;;  %1830 = vmatmul.mubr.bf16.vlgmr.msra.gmra.mrb[0].mxu1 %v875_v25  ;;  %v839_v35 = vadd.f32 %v2413_v15, %v800_v26  ;;  %v777_v14 = vmul.f32 %v1916_v28, %v2283_v56 }
 0x170   : > { %v617_v34 = vpop.xlane.xlu0 %616  ;;  %1927 = vrsqrt.f32 %v701_v30  ;;  %v685_v22 = vmul.f32 0.0078125, %v647_v33  ;;  %v762_v40 = vmul.f32 %v1918_v32, %v2290_v58  ;;  %v854_v56 = vadd.f32 %v2413_v15, %v815_v37 }
 0x171   : > { %v670_v20 = vmul.f32 0.0078125, %v617_v34  ;;  %1929 = vrsqrt.f32 %v716_v13  ;;  %v868_v38 = vpack.c.bf16 %v839_v35, %v838_v52  ;;  %v816_v39 = vmul.f32 %v2404_v29, %v777_v14 }
 0x172   : > { %v1920_v41 = vpop.eup %1919  ;;  %v717_v42 = vadd.f32 1e-05, %v685_v22  ;;  %v801_v48 = vmul.f32 %v2404_v29, %v762_v40 }
 0x173   : > { %v702_v36 = vadd.f32 1e-05, %v670_v20  ;;  %v1922_v45 = vpop.eup %1921  ;;  %v619_v46 = vpop.xlane.xlu1 %618  ;;  %1817 = vmatprep.mubr.bf16.mxu0 %v868_v38  ;;  %v855_v43 = vadd.f32 %v2413_v15, %v816_v39  ;;  %v763_v47 = vmul.f32 %v1920_v41, %v2293_v59 }
 0x174   : > { %v649_v27 = vpop.xlane.xlu0 %648  ;;  %1931 = vrsqrt.f32 %v717_v42  ;;  %v671_v49 = vmul.f32 0.0078125, %v619_v46  ;;  %v778_v58 = vmul.f32 %v1922_v45, %v2301_v60  ;;  %v840_v59 = vadd.f32 %v2413_v15, %v801_v48 }
 0x175   : > { %v686_v50 = vmul.f32 0.0078125, %v649_v27  ;;  %1933 = vrsqrt.f32 %v702_v36  ;;  %v876_v53 = vpack.c.bf16 %v855_v43, %v854_v56  ;;  %v802_v54 = vmul.f32 %v2404_v29, %v763_v47 }
 0x176   : > { %v1924_v55 = vpop.eup %1923  ;;  %v703_v21 = vadd.f32 1e-05, %v671_v49  ;;  %v817_v11 = vmul.f32 %v2404_v29, %v778_v58 }
 0x177   : > { %v718_v16 = vadd.f32 1e-05, %v686_v50  ;;  %v1926_v17 = vpop.eup %1925  ;;  %v651_v44 = vpop.xlane.xlu1 %650  ;;  %1833 = vmatprep.mubr.bf16.mxu1 %v876_v53  ;;  %v841_v19 = vadd.f32 %v2413_v15, %v802_v54  ;;  %v779_v57 = vmul.f32 %v1924_v55, %v2304_v61 }
 0x178   : > { %v621_v18 = vpop.xlane.xlu0 %620  ;;  %1935 = vrsqrt.f32 %v703_v21  ;;  %v687_v60 = vmul.f32 0.0078125, %v651_v44  ;;  %v764_v26 = vmul.f32 %v1926_v17, %v2312_v62  ;;  %v856_v61 = vadd.f32 %v2413_v15, %v817_v11 }
 0x179   : > { %v672_v24 = vmul.f32 0.0078125, %v621_v18  ;;  %1937 = vrsqrt.f32 %v718_v16  ;;  %v869_v51 = vpack.c.bf16 %v841_v19, %v840_v59  ;;  %v818_v25 = vmul.f32 %v2404_v29, %v779_v57 }
 0x17a   : > { %v1928_v28 = vpop.eup %1927  ;;  %v719_v30 = vadd.f32 1e-05, %v687_v60  ;;  %v803_v14 = vmul.f32 %v2404_v29, %v764_v26 }
 0x17b   : > { %v704_v13 = vadd.f32 1e-05, %v672_v24  ;;  %v1930_v32 = vpop.eup %1929  ;;  %v623_v33 = vpop.xlane.xlu1 %622  ;;  %1818 = vmatmul.mubr.bf16.gmra.mrb[4].mxu0 %v869_v51  ;;  %v857_v52 = vadd.f32 %v2413_v15, %v818_v25  ;;  %v765_v35 = vmul.f32 %v1928_v28, %v2315_v63 }
 0x17c   : > { %v653_v34 = vpop.xlane.xlu0 %652  ;;  %1939 = vrsqrt.f32 %v719_v30  ;;  %v673_v37 = vmul.f32 0.0078125, %v623_v33  ;;  %v780_v62 = vmul.f32 %v1930_v32, %v2323_v0  ;;  %v842_v63 = vadd.f32 %v2413_v15, %v803_v14 }
 0x17d   : > { %v688_v22 = vmul.f32 0.0078125, %v653_v34  ;;  %1941 = vrsqrt.f32 %v704_v13  ;;  %v877_v20 = vpack.c.bf16 %v857_v52, %v856_v61  ;;  %v804_v38 = vmul.f32 %v2404_v29, %v765_v35 }
 0x17e   : > { %v1932_v39 = vpop.eup %1931  ;;  %v705_v40 = vadd.f32 1e-05, %v673_v37  ;;  %v819_v56 = vmul.f32 %v2404_v29, %v780_v62 }
 0x17f   : > { %v720_v41 = vadd.f32 1e-05, %v688_v22  ;;  %v1934_v42 = vpop.eup %1933  ;;  %v655_v36 = vpop.xlane.xlu1 %654  ;;  %1834 = vmatmul.mubr.bf16.gmra.mrb[4].mxu1 %v877_v20  ;;  %v843_v46 = vadd.f32 %v2413_v15, %v804_v38  ;;  %v781_v27 = vmul.f32 %v1932_v39, %v2326_v1 }
 0x180   : > { %v625_v45 = vpop.xlane.xlu0 %624  ;;  %1943 = vrsqrt.f32 %v705_v40  ;;  %v689_v0 = vmul.f32 0.0078125, %v655_v36  ;;  %v766_v49 = vmul.f32 %v1934_v42, %v2334_v2  ;;  %v858_v1 = vadd.f32 %v2413_v15, %v819_v56 }
 0x181   : > { %v674_v43 = vmul.f32 0.0078125, %v625_v45  ;;  %1945 = vrsqrt.f32 %v720_v41  ;;  %v870_v47 = vpack.c.bf16 %v843_v46, %v842_v63  ;;  %v820_v48 = vmul.f32 %v2404_v29, %v781_v27 }
 0x182   : > { %v1936_v50 = vpop.eup %1935  ;;  %v721_v58 = vadd.f32 1e-05, %v689_v0  ;;  %v805_v44 = vmul.f32 %v2404_v29, %v766_v49 }
 0x183   : > { %v706_v53 = vadd.f32 1e-05, %v674_v43  ;;  %v1938_v54 = vpop.eup %1937  ;;  %v627_v55 = vpop.xlane.xlu1 %626  ;;  %1821 = vmatprep.mubr.bf16.mxu0 %v870_v47  ;;  %v859_v16 = vadd.f32 %v2413_v15, %v820_v48  ;;  %v767_v17 = vmul.f32 %v1936_v50, %v2337_v3 }
 0x184   : > { %v657_v21 = vpop.xlane.xlu0 %656  ;;  %1947 = vrsqrt.f32 %v721_v58  ;;  %v675_v18 = vmul.f32 0.0078125, %v627_v55  ;;  %v782_v2 = vmul.f32 %v1938_v54, %v2345_v4  ;;  %v844_v26 = vadd.f32 %v2413_v15, %v805_v44  ;;  %v1958_v44 = vld [vmem:[#allocation2] sm:$0xff] }
 0x185   : > { %v690_v59 = vmul.f32 0.0078125, %v657_v21  ;;  %1949 = vrsqrt.f32 %v706_v53  ;;  %v878_v19 = vpack.c.bf16 %v859_v16, %v858_v1  ;;  %v806_v57 = vmul.f32 %v2404_v29, %v767_v17  ;;  %v2513_v1 = vld [vmem:[%s295_s7] ss:$0 sm:$0xff] }
 0x186   : > { %v1940_v11 = vpop.eup %1939  ;;  %v707_v60 = vadd.f32 1e-05, %v675_v18  ;;  %v821_v30 = vmul.f32 %v2404_v29, %v782_v2  ;;  %v1959_v2 = vld [vmem:[#allocation2 + $0x18] sm:$0xff] }
 0x187   : > { %v722_v24 = vadd.f32 1e-05, %v690_v59  ;;  %v1942_v51 = vpop.eup %1941  ;;  %v659_v25 = vpop.xlane.xlu1 %658  ;;  %1837 = vmatprep.mubr.bf16.mxu1 %v878_v19  ;;  %v845_v3 = vadd.f32 %v2413_v15, %v806_v57  ;;  %v783_v28 = vmul.f32 %v1940_v11, %v2348_v5  ;;  %v1960_v11 = vld [vmem:[#allocation2 + $0x8] sm:$0xff] }
 0x188   : > { %1951 = vrsqrt.f32 %v707_v60  ;;  %v691_v4 = vmul.f32 0.0078125, %v659_v25  ;;  %v768_v13 = vmul.f32 %v1942_v51, %v2356_v6  ;;  %v860_v35 = vadd.f32 %v2413_v15, %v821_v30  ;;  %v1961_v25 = vld [vmem:[#allocation2 + $0x90] sm:$0xff]  ;;  %v1962_v30 = vld [vmem:[#allocation2 + $0x80] sm:$0xff] }
 0x189   : > { %1953 = vrsqrt.f32 %v722_v24  ;;  %v871_v32 = vpack.c.bf16 %v845_v3, %v844_v26  ;;  %v822_v33 = vmul.f32 %v2404_v29, %v783_v28 }
 0x18a   : > { %v1944_v34 = vpop.eup %1943  ;;  %v723_v61 = vadd.f32 1e-05, %v691_v4  ;;  %v807_v37 = vmul.f32 %v2404_v29, %v768_v13 }
 0x18b   : > { %v1946_v52 = vpop.eup %1945  ;;  %1822 = vmatmul.mubr.bf16.gmra.mrb[8].mxu0 %v871_v32  ;;  %v861_v14 = vadd.f32 %v2413_v15, %v822_v33  ;;  %v769_v5 = vmul.f32 %v1944_v34, %v2359_v7  ;;  %v1963_v33 = vld [vmem:[#allocation2 + $0x98] sm:$0xff] }
 0x18c   : > { %1955 = vrsqrt.f32 %v723_v61  ;;  %v784_v22 = vmul.f32 %v1946_v52, %v2367_v8  ;;  %v846_v39 = vadd.f32 %v2413_v15, %v807_v37 }
 0x18d   : > { %v879_v6 = vpack.c.bf16 %v861_v14, %v860_v35  ;;  %v808_v62 = vmul.f32 %v2404_v29, %v769_v5  ;;  %v1964_v35 = vld [vmem:[#allocation2 + $0x88] sm:$0xff] }
 0x18e   : > { %v1948_v20 = vpop.eup %1947  ;;  %v823_v42 = vmul.f32 %v2404_v29, %v784_v22 }
 0x18f   : > { %v1950_v38 = vpop.eup %1949  ;;  %1838 = vmatmul.mubr.bf16.gmra.mrb[8].mxu1 %v879_v6  ;;  %v847_v40 = vadd.f32 %v2413_v15, %v808_v62  ;;  %v785_v41 = vmul.f32 %v1948_v20, %v2370_v9  ;;  %v1965_v6 = vld [vmem:[#allocation2 + $0x30] sm:$0xff] }
 0x190   : > { %v770_v7 = vmul.f32 %v1950_v38, %v2377_v23  ;;  %v862_v46 = vadd.f32 %v2413_v15, %v823_v42  ;;  %v1966_v38 = vld [vmem:[#allocation2 + $0x20] sm:$0xff]  ;;  %v1967_v42 = vld [vmem:[#allocation2 + $0x38] sm:$0xff] }
 0x191   : > { %v872_v36 = vpack.c.bf16 %v847_v40, %v846_v39  ;;  %v824_v45 = vmul.f32 %v2404_v29, %v785_v41 }
 0x192   : > { %v1952_v8 = vpop.eup %1951  ;;  %v809_v0 = vmul.f32 %v2404_v29, %v770_v7 }
 0x193   : > { %v1954_v63 = vpop.eup %1953  ;;  %1825 = vmatprep.mubr.bf16.mxu0 %v872_v36  ;;  %v863_v27 = vadd.f32 %v2413_v15, %v824_v45  ;;  %v771_v56 = vmul.f32 %v1952_v8, %v2380_v10  ;;  %v1968_v8 = vld [vmem:[#allocation2 + $0x28] sm:$0xff] }
 0x194   : > { %v786_v9 = vmul.f32 %v1954_v63, %v2387_v31  ;;  %v848_v48 = vadd.f32 %v2413_v15, %v809_v0 }
 0x195   : > { %v880_v43 = vpack.c.bf16 %v863_v27, %v862_v46  ;;  %v810_v23 = vmul.f32 %v2404_v29, %v771_v56  ;;  %v1969_v56 = vld [vmem:[#allocation2 + $0xb0] sm:$0xff] }
 0x196   : > { %v1956_v47 = vpop.eup %1955  ;;  %v825_v58 = vmul.f32 %v2404_v29, %v786_v9 }
 0x197   : > { %1841 = vmatprep.mubr.bf16.mxu1 %v880_v43  ;;  %v849_v49 = vadd.f32 %v2413_v15, %v810_v23  ;;  %v787_v50 = vmul.f32 %v1956_v47, %v2390_v12  ;;  %v1957_v12 = vld [vmem:[#allocation2 + $0x10] sm:$0xff]  ;;  %v1970_v23 = vld [vmem:[#allocation2 + $0xa0] sm:$0xff] }
 0x198   : > { %v864_v31 = vadd.f32 %v2413_v15, %v825_v58 }
 0x199   : > { %v873_v53 = vpack.c.bf16 %v849_v49, %v848_v48  ;;  %v826_v10 = vmul.f32 %v2404_v29, %v787_v50  ;;  %v1971_v50 = vld [vmem:[#allocation2 + $0xb8] sm:$0xff] }
 0x19b   : > { %1826 = vmatmul.mubr.bf16.gmra.mrb[12].mxu0 %v873_v53  ;;  %v865_v54 = vadd.f32 %v2413_v15, %v826_v10 }
 0x19d   : > { %v881_v55 = vpack.c.bf16 %v865_v54, %v864_v31  ;;  %v1972_v31 = vld [vmem:[#allocation2 + $0xa8] sm:$0xff] }
 0x19f   : > { %1842 = vmatmul.mubr.bf16.gmra.mrb[12].mxu1 %v881_v55 }
 0x23e   : > { %v1815_v21 = vpop.f32.mrb[0].mxu0 }
 0x23f   : > { %v1109_v16 = vadd.f32 %v1957_v12, %v1815_v21  ;;  %v980_v17 = vpop.f32.mrb[1].mxu0 }
 0x240   : > { %v1107_v18 = vadd.f32 %v1958_v44, %v980_v17  ;;  %v1816_v29 = vpop.f32.mrb[2].mxu0 }
 0x241   : > { %v1148_v59 = vadd.f32 %v2513_v1, %v1109_v16  ;;  %v1110_v19 = vadd.f32 %v1959_v2, %v1816_v29  ;;  %v983_v15 = vpop.f32.mrb[3].mxu0  ;;  %v1973_v16 = vld [vmem:[#allocation2 + $0x50] sm:$0xff] }
 0x242   : > { %v1146_v57 = vadd.f32 %v2513_v1, %v1107_v18  ;;  %v1108_v60 = vadd.f32 %v1960_v11, %v983_v15  ;;  %v1831_v24 = vpop.f32.mrb[0].mxu1  ;;  %v1974_v18 = vld [vmem:[#allocation2 + $0x40] sm:$0xff] }
 0x243   : > { %1180 = vst [vmem:[#allocation2 + $0x10] sm:$0xff] %v1148_v59  ;;  %v1149_v51 = vadd.f32 %v2513_v1, %v1110_v19  ;;  %v1125_v26 = vadd.f32 %v1961_v25, %v1831_v24  ;;  %v1044_v3 = vpop.f32.mrb[1].mxu1  ;;  %v1975_v19 = vld [vmem:[#allocation2 + $0x58] sm:$0xff] }
 0x244   : > { %1178 = vst [vmem:[#allocation2] sm:$0xff] %v1146_v57  ;;  %v1147_v28 = vadd.f32 %v2513_v1, %v1108_v60  ;;  %v1123_v4 = vadd.f32 %v1962_v30, %v1044_v3  ;;  %v1832_v13 = vpop.f32.mrb[2].mxu1  ;;  %v1976_v60 = vld [vmem:[#allocation2 + $0x48] sm:$0xff] }
 0x245   : > { %1181 = vst [vmem:[#allocation2 + $0x18] sm:$0xff] %v1149_v51  ;;  %v1164_v32 = vadd.f32 %v2513_v1, %v1125_v26  ;;  %v1126_v34 = vadd.f32 %v1963_v33, %v1832_v13  ;;  %v1047_v61 = vpop.f32.mrb[3].mxu1  ;;  %v1977_v26 = vld [vmem:[#allocation2 + $0xd0] sm:$0xff] }
 0x246   : > { %1179 = vst [vmem:[#allocation2 + $0x8] sm:$0xff] %v1147_v28  ;;  %v1162_v52 = vadd.f32 %v2513_v1, %v1123_v4  ;;  %v1124_v14 = vadd.f32 %v1964_v35, %v1047_v61  ;;  %v1978_v4 = vld [vmem:[#allocation2 + $0xc0] sm:$0xff] }
 0x247   : > { %1196 = vst [vmem:[#allocation2 + $0x90] sm:$0xff] %v1164_v32  ;;  %v1165_v5 = vadd.f32 %v2513_v1, %v1126_v34  ;;  %v1979_v34 = vld [vmem:[#allocation2 + $0xd8] sm:$0xff] }
 0x248   : > { %1194 = vst [vmem:[#allocation2 + $0x80] sm:$0xff] %v1162_v52  ;;  %v1163_v37 = vadd.f32 %v2513_v1, %v1124_v14  ;;  %v1980_v14 = vld [vmem:[#allocation2 + $0xc8] sm:$0xff] }
 0x249   : > { %1197 = vst [vmem:[#allocation2 + $0x98] sm:$0xff] %v1165_v5 }
 0x24a   : > { %1195 = vst [vmem:[#allocation2 + $0x88] sm:$0xff] %v1163_v37 }
 0x24e   : > { %v1819_v22 = vpop.f32.mrb[4].mxu0 }
 0x24f   : > { %v1113_v62 = vadd.f32 %v1965_v6, %v1819_v22  ;;  %v996_v20 = vpop.f32.mrb[5].mxu0 }
 0x250   : > { %v1111_v39 = vadd.f32 %v1966_v38, %v996_v20  ;;  %v1820_v40 = vpop.f32.mrb[6].mxu0 }
 0x251   : > { %v1152_v41 = vadd.f32 %v2513_v1, %v1113_v62  ;;  %v1114_v7 = vadd.f32 %v1967_v42, %v1820_v40  ;;  %v999_v36 = vpop.f32.mrb[7].mxu0  ;;  %v1981_v62 = vld [vmem:[#allocation2 + $0x70] sm:$0xff] }
 0x252   : > { %v1150_v45 = vadd.f32 %v2513_v1, %v1111_v39  ;;  %v1112_v63 = vadd.f32 %v1968_v8, %v999_v36  ;;  %v1835_v46 = vpop.f32.mrb[4].mxu1  ;;  %v1982_v39 = vld [vmem:[#allocation2 + $0x60] sm:$0xff] }
 0x253   : > { %1184 = vst [vmem:[#allocation2 + $0x30] sm:$0xff] %v1152_v41  ;;  %v1153_v27 = vadd.f32 %v2513_v1, %v1114_v7  ;;  %v1129_v0 = vadd.f32 %v1969_v56, %v1835_v46  ;;  %v1060_v9 = vpop.f32.mrb[5].mxu1  ;;  %v1983_v7 = vld [vmem:[#allocation2 + $0x78] sm:$0xff] }
 0x254   : > { %1182 = vst [vmem:[#allocation2 + $0x20] sm:$0xff] %v1150_v45  ;;  %v1151_v43 = vadd.f32 %v2513_v1, %v1112_v63  ;;  %v1127_v47 = vadd.f32 %v1970_v23, %v1060_v9  ;;  %v1836_v48 = vpop.f32.mrb[6].mxu1  ;;  %v1984_v63 = vld [vmem:[#allocation2 + $0x68] sm:$0xff] }
 0x255   : > { %1185 = vst [vmem:[#allocation2 + $0x38] sm:$0xff] %v1153_v27  ;;  %v1168_v49 = vadd.f32 %v2513_v1, %v1129_v0  ;;  %v1130_v58 = vadd.f32 %v1971_v50, %v1836_v48  ;;  %v1063_v53 = vpop.f32.mrb[7].mxu1  ;;  %v1985_v0 = vld [vmem:[#allocation2 + $0xf0] sm:$0xff] }
 0x256   : > { %1183 = vst [vmem:[#allocation2 + $0x28] sm:$0xff] %v1151_v43  ;;  %v1166_v10 = vadd.f32 %v2513_v1, %v1127_v47  ;;  %v1128_v54 = vadd.f32 %v1972_v31, %v1063_v53  ;;  %v1986_v47 = vld [vmem:[#allocation2 + $0xe0] sm:$0xff] }
 0x257   : > { %1200 = vst [vmem:[#allocation2 + $0xb0] sm:$0xff] %v1168_v49  ;;  %v1169_v55 = vadd.f32 %v2513_v1, %v1130_v58  ;;  %v1987_v58 = vld [vmem:[#allocation2 + $0xf8] sm:$0xff] }
 0x258   : > { %1198 = vst [vmem:[#allocation2 + $0xa0] sm:$0xff] %v1166_v10  ;;  %v1167_v21 = vadd.f32 %v2513_v1, %v1128_v54  ;;  %v1988_v54 = vld [vmem:[#allocation2 + $0xe8] sm:$0xff] }
 0x259   : > { %1201 = vst [vmem:[#allocation2 + $0xb8] sm:$0xff] %v1169_v55 }
 0x25a   : > { %1199 = vst [vmem:[#allocation2 + $0xa8] sm:$0xff] %v1167_v21 }
 0x25e   : > { %v1823_v12 = vpop.f32.mrb[8].mxu0 }
 0x25f   : > { %v1117_v17 = vadd.f32 %v1973_v16, %v1823_v12  ;;  %v1012_v44 = vpop.f32.mrb[9].mxu0  ;;  %v1214_v16 = vld [vmem:[#allocation2] sm:$0xff] (!%p1529_p6) }
 0x260   : > { %v1115_v29 = vadd.f32 %v1974_v18, %v1012_v44  ;;  %v1824_v59 = vpop.f32.mrb[10].mxu0  ;;  %v1216_v44 = vld [vmem:[#allocation2 + $0x10] sm:$0xff] (!%p1529_p6) }
 0x261   : > { %v1156_v2 = vadd.f32 %v2513_v1, %v1117_v17  ;;  %v1118_v15 = vadd.f32 %v1975_v19, %v1824_v59  ;;  %v1015_v57 = vpop.f32.mrb[11].mxu0  ;;  %v1215_v17 = vld [vmem:[#allocation2 + $0x8] sm:$0xff] (!%p1529_p6)  ;;  %v1218_v59 = vld [vmem:[#allocation2 + $0x20] sm:$0xff] (!%p1529_p6) }
 0x262   : > { %v1154_v11 = vadd.f32 %v2513_v1, %v1115_v29  ;;  %v1116_v24 = vadd.f32 %v1976_v60, %v1015_v57  ;;  %v1839_v51 = vpop.f32.mrb[8].mxu1  ;;  %v1666_v18 = vpack.c.bf16 (!%p1529_p6), %v1215_v17, %v1214_v16  ;;  %v1217_v29 = vld [vmem:[#allocation2 + $0x18] sm:$0xff] (!%p1529_p6)  ;;  %v1220_v57 = vld [vmem:[#allocation2 + $0x30] sm:$0xff] (!%p1529_p6) }
 0x263   : > { %1188 = vst [vmem:[#allocation2 + $0x50] sm:$0xff] %v1156_v2  ;;  %v1157_v25 = vadd.f32 %v2513_v1, %v1118_v15  ;;  %v1133_v3 = vadd.f32 %v1977_v26, %v1839_v51  ;;  %v1076_v28 = vpop.f32.mrb[9].mxu1  ;;  %v1219_v2 = vld [vmem:[#allocation2 + $0x28] sm:$0xff] (!%p1529_p6)  ;;  %v1671_v19 = vpack.c.bf16 (!%p1529_p6), %v1217_v29, %v1216_v44 }
 0x264   : > { %1186 = vst [vmem:[#allocation2 + $0x40] sm:$0xff] %v1154_v11  ;;  %v1155_v30 = vadd.f32 %v2513_v1, %v1116_v24  ;;  %v1131_v13 = vadd.f32 %v1978_v4, %v1076_v28  ;;  %v1840_v32 = vpop.f32.mrb[10].mxu1  ;;  %v1676_v15 = vpack.c.bf16 (!%p1529_p6), %v1219_v2, %v1218_v59  ;;  %v1221_v11 = vld [vmem:[#allocation2 + $0x38] sm:$0xff] (!%p1529_p6)  ;;  %1667 = vst [vmem:[%s2610_s5] sm:$0xff] (!%p1529_p6), %v1666_v18  }
 0x265   : > { %1189 = vst [vmem:[#allocation2 + $0x58] sm:$0xff] %v1157_v25  ;;  %v1172_v33 = vadd.f32 %v2513_v1, %v1133_v3  ;;  %v1134_v61 = vadd.f32 %v1979_v34, %v1840_v32  ;;  %v1079_v52 = vpop.f32.mrb[11].mxu1  ;;  %1758 = vst [vmem:[%s2610_s5 + $0x8] sm:$0xff] (!%p1529_p6), %v1671_v19   ;;  %v1231_v34 = vld [vmem:[#allocation2 + $0x88] sm:$0xff] (!%p1529_p6) }
 0x266   : > { %1187 = vst [vmem:[#allocation2 + $0x48] sm:$0xff] %v1155_v30  ;;  %v1170_v35 = vadd.f32 %v2513_v1, %v1131_v13  ;;  %v1132_v5 = vadd.f32 %v1980_v14, %v1079_v52  ;;  %1759 = vst [vmem:[%s2610_s5 + $0x10] sm:$0xff] (!%p1529_p6), %v1676_v15   ;;  %v1233_v14 = vld [vmem:[#allocation2 + $0x98] sm:$0xff] (!%p1529_p6) }
 0x267   : > { %1204 = vst [vmem:[#allocation2 + $0xd0] sm:$0xff] %v1172_v33  ;;  %v1173_v37 = vadd.f32 %v2513_v1, %v1134_v61  ;;  %v1230_v33 = vld [vmem:[#allocation2 + $0x80] sm:$0xff] (!%p1529_p6) }
 0x268   : > { %1202 = vst [vmem:[#allocation2 + $0xc0] sm:$0xff] %v1170_v35  ;;  %v1171_v22 = vadd.f32 %v2513_v1, %v1132_v5  ;;  %v1706_v52 = vpack.c.bf16 (!%p1529_p6), %v1231_v34, %v1230_v33  ;;  %v1232_v35 = vld [vmem:[#allocation2 + $0x90] sm:$0xff] (!%p1529_p6)  ;;  %v1234_v5 = vld [vmem:[#allocation2 + $0xa0] sm:$0xff] (!%p1529_p6) }
 0x269   : > { %1205 = vst [vmem:[#allocation2 + $0xd8] sm:$0xff] %v1173_v37  ;;  %v1711_v37 = vpack.c.bf16 (!%p1529_p6), %v1233_v14, %v1232_v35 }
 0x26a   : > { %1203 = vst [vmem:[#allocation2 + $0xc8] sm:$0xff] %v1171_v22  ;;  %v1224_v51 = vld [vmem:[#allocation2 + $0x50] sm:$0xff] (!%p1529_p6)  ;;  %v1235_v22 = vld [vmem:[#allocation2 + $0xa8] sm:$0xff] (!%p1529_p6)  ;;  %1765 = vst [vmem:[%s2610_s5 + $0x40] sm:$0xff] (!%p1529_p6), %v1706_v52  }
 0x26b   : > { %v1222_v60 = vld [vmem:[#allocation2 + $0x40] sm:$0xff] (!%p1529_p6)  ;;  %1766 = vst [vmem:[%s2610_s5 + $0x48] sm:$0xff] (!%p1529_p6), %v1711_v37  }
 0x26c   : > { %v1225_v25 = vld [vmem:[#allocation2 + $0x58] sm:$0xff] (!%p1529_p6) }
 0x26d   : > { %v1223_v24 = vld [vmem:[#allocation2 + $0x48] sm:$0xff] (!%p1529_p6)  ;;  %v1691_v3 = vpack.c.bf16 (!%p1529_p6), %v1225_v25, %v1224_v51 }
 0x26e   : > { %v1827_v6 = vpop.f32.mrb[12].mxu0  ;;  %v1686_v26 = vpack.c.bf16 (!%p1529_p6), %v1223_v24, %v1222_v60 }
 0x26f   : > { %v1121_v20 = vadd.f32 %v1981_v62, %v1827_v6  ;;  %v1028_v38 = vpop.f32.mrb[13].mxu0  ;;  %1762 = vst [vmem:[%s2610_s5 + $0x28] sm:$0xff] (!%p1529_p6), %v1691_v3   ;;  %v1236_v6 = vld [vmem:[#allocation2 + $0xb0] sm:$0xff] (!%p1529_p6)  ;;  %v1237_v62 = vld [vmem:[#allocation2 + $0xb8] sm:$0xff] (!%p1529_p6) }
 0x270   : > { %v1119_v40 = vadd.f32 %v1982_v39, %v1028_v38  ;;  %v1828_v41 = vpop.f32.mrb[14].mxu0  ;;  %1761 = vst [vmem:[%s2610_s5 + $0x20] sm:$0xff] (!%p1529_p6), %v1686_v26   ;;  %v1721_v38 = vpack.c.bf16 (!%p1529_p6), %v1237_v62, %v1236_v6  ;;  %v1238_v39 = vld [vmem:[#allocation2 + $0xc0] sm:$0xff] (!%p1529_p6) }
 0x271   : > { %v1160_v42 = vadd.f32 %v2513_v1, %v1121_v20  ;;  %v1122_v36 = vadd.f32 %v1983_v7, %v1828_v41  ;;  %v1031_v45 = vpop.f32.mrb[15].mxu0  ;;  %v1716_v20 = vpack.c.bf16 (!%p1529_p6), %v1235_v22, %v1234_v5  ;;  %v1240_v41 = vld [vmem:[#allocation2 + $0xd0] sm:$0xff] (!%p1529_p6)  ;;  %v1241_v7 = vld [vmem:[#allocation2 + $0xd8] sm:$0xff] (!%p1529_p6) }
 0x272   : > { %v1158_v8 = vadd.f32 %v2513_v1, %v1119_v40  ;;  %v1120_v46 = vadd.f32 %v1984_v63, %v1031_v45  ;;  %v1843_v27 = vpop.f32.mrb[12].mxu1  ;;  %v1239_v40 = vld [vmem:[#allocation2 + $0xc8] sm:$0xff] (!%p1529_p6)  ;;  %1768 = vst [vmem:[%s2610_s5 + $0x58] sm:$0xff] (!%p1529_p6), %v1721_v38  }
 0x273   : > { %1192 = vst [vmem:[#allocation2 + $0x70] sm:$0xff] %v1160_v42  ;;  %v1161_v56 = vadd.f32 %v2513_v1, %v1122_v36  ;;  %v1137_v9 = vadd.f32 %v1985_v0, %v1843_v27  ;;  %v1092_v43 = vpop.f32.mrb[13].mxu1  ;;  %v1726_v42 = vpack.c.bf16 (!%p1529_p6), %v1239_v40, %v1238_v39  ;;  %1767 = vst [vmem:[%s2610_s5 + $0x50] sm:$0xff] (!%p1529_p6), %v1716_v20  }
 0x274   : > { %1190 = vst [vmem:[#allocation2 + $0x60] sm:$0xff] %v1158_v8  ;;  %v1159_v23 = vadd.f32 %v2513_v1, %v1120_v46  ;;  %v1135_v48 = vadd.f32 %v1986_v47, %v1092_v43  ;;  %v1844_v49 = vpop.f32.mrb[14].mxu1  ;;  %1213 = sbr.rel (%p1529_p6) target bundleno = 645 (0x285), region = 48  ;;  %v1731_v8 = vpack.c.bf16 (!%p1529_p6), %v1241_v7, %v1240_v41 }
 0x275   : > { %1193 = vst [vmem:[#allocation2 + $0x78] sm:$0xff] %v1161_v56  ;;  %v1176_v50 = vadd.f32 %v2513_v1, %v1137_v9  ;;  %v1138_v53 = vadd.f32 %v1987_v58, %v1844_v49  ;;  %v1095_v10 = vpop.f32.mrb[15].mxu1  ;;  %1769 = vst [vmem:[%s2610_s5 + $0x60] sm:$0xff] (!%p1529_p6), %v1726_v42  }
 0x276   : > { %1191 = vst [vmem:[#allocation2 + $0x68] sm:$0xff] %v1159_v23  ;;  %v1174_v31 = vadd.f32 %v2513_v1, %v1135_v48  ;;  %v1136_v55 = vadd.f32 %v1988_v54, %v1095_v10  ;;  %1770 = vst [vmem:[%s2610_s5 + $0x68] sm:$0xff] (!%p1529_p6), %v1731_v8  }
 0x277   : > { %1208 = vst [vmem:[#allocation2 + $0xf0] sm:$0xff] %v1176_v50  ;;  %v1177_v21 = vadd.f32 %v2513_v1, %v1138_v53 }
 0x278   : > { %1206 = vst [vmem:[#allocation2 + $0xe0] sm:$0xff] %v1174_v31  ;;  %v1175_v12 = vadd.f32 %v2513_v1, %v1136_v55  ;;  %v1681_v1 = vpack.c.bf16 (!%p1529_p6), %v1221_v11, %v1220_v57 }
 0x279   : > { %1209 = vst [vmem:[#allocation2 + $0xf8] sm:$0xff] %v1177_v21 }
 0x27a   : > { %1207 = vst [vmem:[#allocation2 + $0xe8] sm:$0xff] %v1175_v12  ;;  %v1228_v4 = vld [vmem:[#allocation2 + $0x70] sm:$0xff] (!%p1529_p6)  ;;  %1760 = vst [vmem:[%s2610_s5 + $0x18] sm:$0xff] (!%p1529_p6), %v1681_v1  }
 0x27b   : > { %v1226_v28 = vld [vmem:[#allocation2 + $0x60] sm:$0xff] }
 0x27c   : > { %v1229_v32 = vld [vmem:[#allocation2 + $0x78] sm:$0xff] }
 0x27d   : > { %v1227_v30 = vld [vmem:[#allocation2 + $0x68] sm:$0xff]  ;;  %v1701_v61 = vpack.c.bf16 %v1229_v32, %v1228_v4 }
 0x27e   : > { %v1696_v13 = vpack.c.bf16 %v1227_v30, %v1226_v28  ;;  %v1244_v46 = vld [vmem:[#allocation2 + $0xf0] sm:$0xff] }
 0x27f   : > { %1764 = vst [vmem:[%s2610_s5 + $0x38] sm:$0xff] %v1701_v61   ;;  %v1242_v36 = vld [vmem:[#allocation2 + $0xe0] sm:$0xff] }
 0x280   : > { %1763 = vst [vmem:[%s2610_s5 + $0x30] sm:$0xff] %v1696_v13   ;;  %v1245_v27 = vld [vmem:[#allocation2 + $0xf8] sm:$0xff] }
 0x281   : > { %v1243_v45 = vld [vmem:[#allocation2 + $0xe8] sm:$0xff]  ;;  %v1741_v56 = vpack.c.bf16 %v1245_v27, %v1244_v46 }
 0x282   : > { %v1736_v63 = vpack.c.bf16 %v1243_v45, %v1242_v36 }
 0x283   : > { %1772 = vst [vmem:[%s2610_s5 + $0x78] sm:$0xff] %v1741_v56  }
 0x284   : > { %1771 = vst [vmem:[%s2610_s5 + $0x70] sm:$0xff] %v1736_v63  }
 0x285 PF: > { %s15_s20 = sadd.s32 1, %s2011_s20   ;;  %s2611_s18 = smov %s2007_s19 }
 0x286   : > { %p12_p7 = scmp.ge.s32.totalorder %s15_s20, 4   ;;  %s2612_s19 = smov %s2614_s21 }
 0x288   :  { %14 = sbr.rel (!%p12_p7) target bundleno = 2 (0x2), region = 90 }

</bundles_post_ra>
